<compile_context>
chip_gen: v6e
topology: v6e:2x2x1
jax: 0.10.0
libtpu: 0.0.40
codegen_flags: <defaults>
</compile_context>

<pallas_src>
import functools

import jax
import jax.numpy as jnp
from jax.experimental import pallas as pl
from jax.experimental.pallas import tpu as pltpu


def _round_up(x, m):
    return (x + m - 1) // m * m


def _decoder_kernel(x_hbm, w_ref, s_ref, o_ref, xbuf, sem, *,
                    rows_out, rows_in, Wp, C_hbm, Kp, Cop, prepacked):
    """One (batch n, row-tile t) grid step.

    x_hbm : (N, H_pad, Wp, C_hbm) bf16 in HBM (pl.ANY)  -- manual halo DMA.
    w_ref : (3, Kp, Cop) bf16 folded conv*BN weights, one slab per row tap dy.
    s_ref : (1, Cop) f32 folded BN shift.
    o_ref : (1, rows_out, Wp, Cop) bf16 output block.
    xbuf  : (2, rows_in, Wp, C_hbm) bf16 VMEM double buffer (rows_in = rows_out+2).
    sem   : (2,) DMA semaphores.
    """
    n = pl.program_id(0)
    t = pl.program_id(1)
    T = pl.num_programs(1)
    slot = t & 1

    def copy_in(tile, slot_):
        # Overlapping source windows (2-row halo) on non-overlapping output tiles.
        return pltpu.make_async_copy(
            x_hbm.at[n, pl.ds(tile * rows_out, rows_in)],
            xbuf.at[slot_],
            sem.at[slot_])

    @pl.when(t == 0)
    def _():
        copy_in(0, 0).start()                    # prime this image's pipeline

    @pl.when(t + 1 < T)
    def _():
        copy_in(t + 1, 1 - slot).start()         # prefetch next row tile

    copy_in(t, slot).wait()

    xin = xbuf[slot]                             # (rows_in, Wp, C_hbm) bf16

    if prepacked:
        # Width taps already packed by the wrapper:
        #   xin[..., dx*Cin + c] = x[.., w + dx - 1, c]; lanes [3*Cin, Kp) are 0.
        B = xin
    else:
        # C_hbm is a multiple of 128: lane-aligned width im2col, K = 3*C_hbm.
        zc = jnp.zeros((rows_in, 1, C_hbm), xin.dtype)
        left = jnp.concatenate([zc, xin[:, :Wp - 1, :]], axis=1)
        right = jnp.concatenate([xin[:, 1:, :], zc], axis=1)
        B = jnp.concatenate([left, xin, right], axis=-1)   # (rows_in, Wp, Kp)

    # 3x3 conv as 3 row-tap matmuls; accumulator <= ~64 KiB by construction.
    acc = jnp.dot(B[0:rows_out].reshape(rows_out * Wp, Kp), w_ref[0],
                  preferred_element_type=jnp.float32)
    acc = acc + jnp.dot(B[1:rows_out + 1].reshape(rows_out * Wp, Kp), w_ref[1],
                        preferred_element_type=jnp.float32)
    acc = acc + jnp.dot(B[2:rows_out + 2].reshape(rows_out * Wp, Kp), w_ref[2],
                        preferred_element_type=jnp.float32)

    y = jnp.maximum(acc + s_ref[...], 0.0)       # BN shift + ReLU in f32
    o_ref[0] = y.reshape(rows_out, Wp, Cop).astype(o_ref.dtype)


def _fold_conv_bn(w_oihw, b, gamma, beta, mean, var, cstride, Kp, Cop, eps=1e-5):
    """Fold conv bias + inference BatchNorm into bf16 weights and an f32 shift.

    wd[dy, dx*cstride + ci, co] = W[co, ci, dy, dx] * gamma[co]/sqrt(var[co]+eps)
    """
    cout, cin = w_oihw.shape[0], w_oihw.shape[1]
    scale = gamma / jnp.sqrt(var + eps)
    shift = (b - mean) * scale + beta
    ws = (w_oihw * scale[:, None, None, None]).astype(jnp.float32)
    wt = jnp.transpose(ws, (2, 3, 1, 0))                       # (3, 3, Cin, Cout)
    wd = jnp.zeros((3, Kp, Cop), jnp.float32)
    for dx in range(3):
        wd = wd.at[:, dx * cstride: dx * cstride + cin, :cout].set(wt[:, dx])
    sh = jnp.zeros((1, Cop), jnp.float32).at[0, :cout].set(shift.astype(jnp.float32))
    return wd.astype(jnp.bfloat16), sh


def decoder_block(x_nchw, params, encoder_index, decoder_index, *, nchw_out=True):
    """DecoderBlock forward (identity / MaxPool2d(2**k) scaling paths)."""
    w, b, g, be, m, v = params
    N, Cin, H, W = x_nchw.shape
    Cout, wc_in, kh, kw = w.shape
    assert wc_in == Cin and kh == 3 and kw == 3

    if encoder_index > decoder_index:
        # TODO(synk): UpsamplingBilinear2d (align_corners=True) path not implemented.
        raise NotImplementedError("bilinear-upsample DecoderBlock path not implemented")

    # ---- spatial scaling, fused into the single NCHW->NHWC/bf16 wrapper pass ----
    if encoder_index == decoder_index:
        Hp, Wp = H, W
        xs = x_nchw
    else:
        s = 2 ** (decoder_index - encoder_index)
        assert H % s == 0 and W % s == 0, \
            "TODO(synk): PyTorch MaxPool2d floors odd sizes; not supported here"
        Hp, Wp = H // s, W // s
        xs = x_nchw.reshape(N, Cin, Hp, s, Wp, s).max(axis=(3, 5))

    xh = jnp.transpose(xs, (0, 2, 3, 1)).astype(jnp.bfloat16)       # (N,Hp,Wp,Cin)

    # ---- K packing: combined 3*Cin padded to a lane multiple (not per-tap) ----
    Cop = _round_up(Cout, 128)
    if Cin % 128 == 0:
        prepacked = False
        C_hbm, Kp, cstride = Cin, 3 * Cin, Cin
        xk = xh
    elif 3 * Cin <= _round_up(Cin, 128):
        # Small Cin: wrapper packs the 3 width taps into the channel dim, so the
        # MXU K becomes round_up(3*Cin,128) (128 for Cin<=42) instead of 3*128.
        prepacked = True
        Kp = _round_up(3 * Cin, 128)
        C_hbm, cstride = Kp, Cin
        xw = jnp.pad(xh, ((0, 0), (0, 0), (1, 1), (0, 0)))
        xk = jnp.concatenate(
            [xw[:, :, 0:Wp, :], xw[:, :, 1:Wp + 1, :], xw[:, :, 2:Wp + 2, :]],
            axis=-1)
        if Kp > 3 * Cin:
            xk = jnp.pad(xk, ((0, 0), (0, 0), (0, 0), (0, Kp - 3 * Cin)))
    else:
        # Moderate, non-128-aligned Cin: pad channels to a lane multiple and do
        # the width im2col in-kernel with lane-aligned concatenates.
        prepacked = False
        C_hbm = _round_up(Cin, 128)
        Kp, cstride = 3 * C_hbm, C_hbm
        xk = jnp.pad(xh, ((0, 0), (0, 0), (0, 0), (0, C_hbm - Cin)))

    wd, sh = _fold_conv_bn(w, b, g, be, m, v, cstride, Kp, Cop)

    # ---- row-tile size: f32 accumulator <= ~64 KiB, DMA double buffer <= ~4 MiB ----
    acc_budget = 64 * 1024
    R = max(1, min(Hp, acc_budget // (Wp * Cop * 4)))
    in_cap = max(1, (4 << 20) // (2 * Wp * C_hbm * 2) - 2)
    R = min(R, in_cap)
    T = pl.cdiv(Hp, R)
    rows_in = R + 2

    # One zero halo row on top; enough zero rows below so every fixed-size
    # (rows_in) DMA window stays in bounds (also covers a ragged last tile).
    xk = jnp.pad(xk, ((0, 0), (1, T * R - Hp + 1), (0, 0), (0, 0)))

    # ---- explicit VMEM budget -> vmem_limit_bytes (v7x has only 64 MiB) ----
    def vb(shape, itemsize):
        sl = list(shape)
        sl[-1] = _round_up(sl[-1], 128)
        if len(sl) >= 2:
            sl[-2] = _round_up(sl[-2], 8)
        tot = 1
        for d in sl:
            tot *= d
        return tot * itemsize

    est = (2 * vb((3, Kp, Cop), 2)              # weights (double-buffered)
           + 2 * vb((1, Cop), 4)                # shift
           + 2 * vb((R, Wp, Cop), 2)            # bf16 output block
           + vb((2, rows_in, Wp, C_hbm), 2)     # DMA double buffer
           + 2 * (vb((rows_in, Wp, Kp), 2)      # im2col value / spill headroom
                  + vb((R * Wp, Cop), 4)))      # f32 accumulator
    vmem_limit = int(min(112 << 20, max(32 << 20, 2 * est)))

    kernel = functools.partial(
        _decoder_kernel, rows_out=R, rows_in=rows_in, Wp=Wp, C_hbm=C_hbm,
        Kp=Kp, Cop=Cop, prepacked=prepacked)

    out = pl.pallas_call(
        kernel,
        out_shape=jax.ShapeDtypeStruct((N, T * R, Wp, Cop), jnp.bfloat16),
        grid_spec=pltpu.PrefetchScalarGridSpec(
            num_scalar_prefetch=0,
            grid=(N, T),
            in_specs=[
                pl.BlockSpec(memory_space=pl.ANY),                   # x: manual halo DMA
                pl.BlockSpec((3, Kp, Cop), lambda n, t: (0, 0, 0)),  # folded weights
                pl.BlockSpec((1, Cop), lambda n, t: (0, 0)),         # BN shift
            ],
            out_specs=pl.BlockSpec((1, R, Wp, Cop), lambda n, t: (n, t, 0, 0)),
            scratch_shapes=[
                pltpu.VMEM((2, rows_in, Wp, C_hbm), jnp.bfloat16),   # DMA double buffer
                pltpu.SemaphoreType.DMA((2,)),
            ],
        ),
        compiler_params=pltpu.CompilerParams(
            # Row-tile axis stays "arbitrary": the cross-step DMA prefetch assumes
            # sequential t within each image; batch axis is megacore-parallel.
            dimension_semantics=("parallel", "arbitrary"),
            vmem_limit_bytes=vmem_limit),
    )(xk, wd, sh)

    out = out[:, :Hp]                      # drop ragged row padding (no-op if divisible)
    if nchw_out:
        return jnp.transpose(out[..., :Cout].astype(jnp.float32), (0, 3, 1, 2))
    # Channel-padded NHWC bf16 (lanes [Cout:Cop) are zero): lets a decoder chain
    # stay in the kernel-native layout and skip the output transpose pass.
    return out


def decoder_block_reference(x, params, encoder_index, decoder_index, eps=1e-5):
    """Pure-JAX reference (NCHW, f32)."""
    w, b, g, be, m, v = params
    if encoder_index < decoder_index:
        s = 2 ** (decoder_index - encoder_index)
        N, C, H, W = x.shape
        x = x.reshape(N, C, H // s, s, W // s, s).max(axis=(3, 5))
    elif encoder_index > decoder_index:
        raise NotImplementedError
    y = jax.lax.conv_general_dilated(
        x, w, window_strides=(1, 1), padding=((1, 1), (1, 1)),
        dimension_numbers=('NCHW', 'OIHW', 'NCHW'))
    y = y + b[None, :, None, None]
    y = (g[None, :, None, None] * (y - m[None, :, None, None])
         / jnp.sqrt(v + eps)[None, :, None, None] + be[None, :, None, None])
    return jnp.maximum(y, 0.0)


def _make_params(key, cin, cout, wscale=0.2):
    ks = jax.random.split(key, 6)
    w = wscale * jax.random.normal(ks[0], (cout, cin, 3, 3), jnp.float32)
    b = 0.1 * jax.random.normal(ks[1], (cout,), jnp.float32)
    g = 1.0 + 0.1 * jax.random.normal(ks[2], (cout,), jnp.float32)
    be = 0.1 * jax.random.normal(ks[3], (cout,), jnp.float32)
    m = 0.1 * jax.random.normal(ks[4], (cout,), jnp.float32)
    v = jax.random.uniform(ks[5], (cout,), jnp.float32, 0.5, 1.5)
    return (w, b, g, be, m, v)


if __name__ == "__main__":
    key = jax.random.PRNGKey(0)
    k_x1, k_p1, k_x2, k_p2, k_x3, k_p3 = jax.random.split(key, 6)

    run = jax.jit(decoder_block, static_argnums=(2, 3))

    # Case 1: encoder_index=1 < decoder_index=2 -> MaxPool2d(2) + conv/BN/ReLU.
    # (small-Cin prepacked-K path, pooled 8x8 output)
    N, Cin, H, W, Cout = 2, 4, 16, 16, 8
    x1 = jax.random.normal(k_x1, (N, Cin, H, W), jnp.float32)
    p1 = _make_params(k_p1, Cin, Cout)
    out1 = jax.block_until_ready(run(x1, p1, 1, 2))
    ref1 = jax.block_until_ready(decoder_block_reference(x1, p1, 1, 2))
    assert out1.shape == (N, Cout, H // 2, W // 2), out1.shape
    assert jnp.allclose(out1, ref1, atol=5e-2, rtol=5e-2), \
        float(jnp.max(jnp.abs(out1 - ref1)))

    # Case 2: encoder_index == decoder_index -> identity + conv/BN/ReLU.
    # (small-Cin prepacked-K path, 2 row tiles -> exercises the DMA prefetch)
    Cin2 = 8
    x2 = jax.random.normal(k_x2, (N, Cin2, H, W), jnp.float32)
    p2 = _make_params(k_p2, Cin2, Cout)
    out2 = jax.block_until_ready(run(x2, p2, 2, 2))
    ref2 = jax.block_until_ready(decoder_block_reference(x2, p2, 2, 2))
    assert out2.shape == (N, Cout, H, W), out2.shape
    assert jnp.allclose(out2, ref2, atol=5e-2, rtol=5e-2), \
        float(jnp.max(jnp.abs(out2 - ref2)))

    # Case 3: Cin = 128 -> in-kernel lane-aligned im2col path (K = 3*Cin, no pad).
    # Wider bf16 reduction (K = 1152) -> slightly looser absolute tolerance.
    Cin3 = 128
    x3 = jax.random.normal(k_x3, (1, Cin3, H, W), jnp.float32)
    p3 = _make_params(k_p3, Cin3, Cout, wscale=0.05)
    out3 = jax.block_until_ready(run(x3, p3, 1, 1))
    ref3 = jax.block_until_ready(decoder_block_reference(x3, p3, 1, 1))
    assert out3.shape == (1, Cout, H, W), out3.shape
    assert jnp.allclose(out3, ref3, atol=1e-1, rtol=5e-2), \
        float(jnp.max(jnp.abs(out3 - ref3)))

    print("KERNEL_OK")
</pallas_src>

<mosaic_0001>
module attributes {stable_mosaic.version = 11 : i64} {
  func.func @_decoder_kernel(%arg0: i32, %arg1: i32, %arg2: memref<2x10x8x128xbf16, #tpu.memory_space<any>>, %arg3: memref<3x128x128xbf16, #tpu.memory_space<vmem>>, %arg4: memref<1x128xf32, #tpu.memory_space<vmem>>, %arg5: memref<1x8x8x128xbf16, #tpu.memory_space<vmem>>, %arg6: memref<2x10x8x128xbf16, #tpu.memory_space<vmem>>, %arg7: memref<2x!tpu.dma_semaphore, #tpu.memory_space<semaphore_mem>>) attributes {dimension_semantics = [#tpu.dimension_semantics<parallel>, #tpu.dimension_semantics<arbitrary>], iteration_bounds = array<i64: 2, 1>, scalar_prefetch = 0 : i64, scratch_operands = 2 : i64, tpu.core_type = #tpu.core_type<tc>, window_params = [{}, {pipeline_mode = #tpu.pipeline_mode<synchronous>, transform_indices = @transform_1, window_bounds = array<i64: 3, 128, 128>}, {pipeline_mode = #tpu.pipeline_mode<synchronous>, transform_indices = @transform_2, window_bounds = array<i64: 1, 128>}, {transform_indices = @transform_3, window_bounds = array<i64: 1, 8, 8, 128>}]} {
    %c1_i32 = arith.constant 1 : i32
    %0 = arith.andi %arg1, %c1_i32 : i32
    %c0_i32 = arith.constant 0 : i32
    %1 = arith.cmpi eq, %arg1, %c0_i32 : i32
    %2 = arith.extui %1 : i1 to i32
    %c0_i32_0 = arith.constant 0 : i32
    %3 = arith.cmpi ne, %2, %c0_i32_0 : i32
    scf.if %3 {
      %c0_i32_27 = arith.constant 0 : i32
      %c0_i32_28 = arith.constant 0 : i32
      %c0_i32_29 = arith.constant 0 : i32
      %c0_i32_30 = arith.constant 0 : i32
      %c0_i32_31 = arith.constant 0 : i32
      %45 = tpu.memref_slice %arg2[%arg0, %c0_i32_29, %c0_i32_30, %c0_i32_31] : memref<2x10x8x128xbf16, #tpu.memory_space<any>> -> memref<1x10x8x128xbf16, #tpu.memory_space<any>>
      %46 = tpu.memref_squeeze %45 : memref<1x10x8x128xbf16, #tpu.memory_space<any>> -> memref<10x8x128xbf16, #tpu.memory_space<any>>
      %c0_i32_32 = arith.constant 0 : i32
      %c0_i32_33 = arith.constant 0 : i32
      %c0_i32_34 = arith.constant 0 : i32
      %47 = tpu.memref_slice %arg6[%c0_i32_27, %c0_i32_32, %c0_i32_33, %c0_i32_34] : memref<2x10x8x128xbf16, #tpu.memory_space<vmem>> -> memref<1x10x8x128xbf16, #tpu.memory_space<vmem>>
      %48 = tpu.memref_squeeze %47 : memref<1x10x8x128xbf16, #tpu.memory_space<vmem>> -> memref<10x8x128xbf16, #tpu.memory_space<vmem>>
      %49 = tpu.memref_slice %arg7[%c0_i32_28] : memref<2x!tpu.dma_semaphore, #tpu.memory_space<semaphore_mem>> -> memref<1x!tpu.dma_semaphore, #tpu.memory_space<semaphore_mem>>
      %50 = tpu.memref_squeeze %49 : memref<1x!tpu.dma_semaphore, #tpu.memory_space<semaphore_mem>> -> memref<!tpu.dma_semaphore, #tpu.memory_space<semaphore_mem>>
      tpu.enqueue_dma source(%46 : memref<10x8x128xbf16, #tpu.memory_space<any>>) target(%48 : memref<10x8x128xbf16, #tpu.memory_space<vmem>>) target_semaphore(%50 : memref<!tpu.dma_semaphore, #tpu.memory_space<semaphore_mem>>)
    } else {
    }
    %c1_i32_1 = arith.constant 1 : i32
    %4 = arith.addi %arg1, %c1_i32_1 : i32
    %c1_i32_2 = arith.constant 1 : i32
    %5 = arith.cmpi slt, %4, %c1_i32_2 : i32
    %6 = arith.extui %5 : i1 to i32
    %c0_i32_3 = arith.constant 0 : i32
    %7 = arith.cmpi ne, %6, %c0_i32_3 : i32
    scf.if %7 {
      %c1_i32_27 = arith.constant 1 : i32
      %45 = arith.addi %arg1, %c1_i32_27 : i32
      %c1_i32_28 = arith.constant 1 : i32
      %46 = arith.subi %c1_i32_28, %0 : i32
      %c8_i32_29 = arith.constant 8 : i32
      %47 = arith.muli %45, %c8_i32_29 : i32
      %c0_i32_30 = arith.constant 0 : i32
      %c0_i32_31 = arith.constant 0 : i32
      %48 = tpu.memref_slice %arg2[%arg0, %47, %c0_i32_30, %c0_i32_31] : memref<2x10x8x128xbf16, #tpu.memory_space<any>> -> memref<1x10x8x128xbf16, #tpu.memory_space<any>>
      %49 = tpu.memref_squeeze %48 : memref<1x10x8x128xbf16, #tpu.memory_space<any>> -> memref<10x8x128xbf16, #tpu.memory_space<any>>
      %c0_i32_32 = arith.constant 0 : i32
      %c0_i32_33 = arith.constant 0 : i32
      %c0_i32_34 = arith.constant 0 : i32
      %50 = tpu.memref_slice %arg6[%46, %c0_i32_32, %c0_i32_33, %c0_i32_34] : memref<2x10x8x128xbf16, #tpu.memory_space<vmem>> -> memref<1x10x8x128xbf16, #tpu.memory_space<vmem>>
      %51 = tpu.memref_squeeze %50 : memref<1x10x8x128xbf16, #tpu.memory_space<vmem>> -> memref<10x8x128xbf16, #tpu.memory_space<vmem>>
      %52 = tpu.memref_slice %arg7[%46] : memref<2x!tpu.dma_semaphore, #tpu.memory_space<semaphore_mem>> -> memref<1x!tpu.dma_semaphore, #tpu.memory_space<semaphore_mem>>
      %53 = tpu.memref_squeeze %52 : memref<1x!tpu.dma_semaphore, #tpu.memory_space<semaphore_mem>> -> memref<!tpu.dma_semaphore, #tpu.memory_space<semaphore_mem>>
      tpu.enqueue_dma source(%49 : memref<10x8x128xbf16, #tpu.memory_space<any>>) target(%51 : memref<10x8x128xbf16, #tpu.memory_space<vmem>>) target_semaphore(%53 : memref<!tpu.dma_semaphore, #tpu.memory_space<semaphore_mem>>)
    } else {
    }
    %c8_i32 = arith.constant 8 : i32
    %8 = arith.muli %arg1, %c8_i32 : i32
    %c0_i32_4 = arith.constant 0 : i32
    %c0_i32_5 = arith.constant 0 : i32
    %9 = tpu.memref_slice %arg2[%arg0, %8, %c0_i32_4, %c0_i32_5] : memref<2x10x8x128xbf16, #tpu.memory_space<any>> -> memref<1x10x8x128xbf16, #tpu.memory_space<any>>
    %10 = tpu.memref_squeeze %9 : memref<1x10x8x128xbf16, #tpu.memory_space<any>> -> memref<10x8x128xbf16, #tpu.memory_space<any>>
    %c0_i32_6 = arith.constant 0 : i32
    %c0_i32_7 = arith.constant 0 : i32
    %c0_i32_8 = arith.constant 0 : i32
    %11 = tpu.memref_slice %arg6[%0, %c0_i32_6, %c0_i32_7, %c0_i32_8] : memref<2x10x8x128xbf16, #tpu.memory_space<vmem>> -> memref<1x10x8x128xbf16, #tpu.memory_space<vmem>>
    %12 = tpu.memref_squeeze %11 : memref<1x10x8x128xbf16, #tpu.memory_space<vmem>> -> memref<10x8x128xbf16, #tpu.memory_space<vmem>>
    %13 = tpu.memref_slice %arg7[%0] : memref<2x!tpu.dma_semaphore, #tpu.memory_space<semaphore_mem>> -> memref<1x!tpu.dma_semaphore, #tpu.memory_space<semaphore_mem>>
    %14 = tpu.memref_squeeze %13 : memref<1x!tpu.dma_semaphore, #tpu.memory_space<semaphore_mem>> -> memref<!tpu.dma_semaphore, #tpu.memory_space<semaphore_mem>>
    tpu.wait_dma2 semaphore(%14 : memref<!tpu.dma_semaphore, #tpu.memory_space<semaphore_mem>>) src(%10 : memref<10x8x128xbf16, #tpu.memory_space<any>>) dst(%12 : memref<10x8x128xbf16, #tpu.memory_space<vmem>>)
    %15 = arith.index_cast %0 : i32 to index
    %c0 = arith.constant 0 : index
    %c0_9 = arith.constant 0 : index
    %c0_10 = arith.constant 0 : index
    %16 = vector.load %arg6[%15, %c0, %c0_9, %c0_10] : memref<2x10x8x128xbf16, #tpu.memory_space<vmem>>, vector<1x10x8x128xbf16>
    %17 = vector.shape_cast %16 : vector<1x10x8x128xbf16> to vector<10x8x128xbf16>
    %18 = vector.extract_strided_slice %17 {offsets = [0, 0, 0], sizes = [8, 8, 128], strides = [1, 1, 1]} : vector<10x8x128xbf16> to vector<8x8x128xbf16>
    %19 = vector.shape_cast %18 : vector<8x8x128xbf16> to vector<64x128xbf16>
    %c0_11 = arith.constant 0 : index
    %c0_12 = arith.constant 0 : index
    %c0_13 = arith.constant 0 : index
    %20 = vector.load %arg3[%c0_11, %c0_12, %c0_13] : memref<3x128x128xbf16, #tpu.memory_space<vmem>>, vector<1x128x128xbf16>
    %21 = vector.shape_cast %20 : vector<1x128x128xbf16> to vector<128x128xbf16>
    %cst = arith.constant dense<0.000000e+00> : vector<64x128xf32>
    %22 = tpu.matmul %19, %21, %cst {dimension_numbers = #tpu.dot_dimension_numbers<[1], [0], [0], [1], [0, 0, 1, 1], [], []>} : vector<64x128xbf16>, vector<128x128xbf16>, vector<64x128xf32> -> vector<64x128xf32>
    %23 = vector.extract_strided_slice %17 {offsets = [1, 0, 0], sizes = [8, 8, 128], strides = [1, 1, 1]} : vector<10x8x128xbf16> to vector<8x8x128xbf16>
    %24 = vector.shape_cast %23 : vector<8x8x128xbf16> to vector<64x128xbf16>
    %c1 = arith.constant 1 : index
    %c0_14 = arith.constant 0 : index
    %c0_15 = arith.constant 0 : index
    %25 = vector.load %arg3[%c1, %c0_14, %c0_15] : memref<3x128x128xbf16, #tpu.memory_space<vmem>>, vector<1x128x128xbf16>
    %26 = vector.shape_cast %25 : vector<1x128x128xbf16> to vector<128x128xbf16>
    %cst_16 = arith.constant dense<0.000000e+00> : vector<64x128xf32>
    %27 = tpu.matmul %24, %26, %cst_16 {dimension_numbers = #tpu.dot_dimension_numbers<[1], [0], [0], [1], [0, 0, 1, 1], [], []>} : vector<64x128xbf16>, vector<128x128xbf16>, vector<64x128xf32> -> vector<64x128xf32>
    %28 = arith.addf %22, %27 : vector<64x128xf32>
    %29 = vector.extract_strided_slice %17 {offsets = [2, 0, 0], sizes = [8, 8, 128], strides = [1, 1, 1]} : vector<10x8x128xbf16> to vector<8x8x128xbf16>
    %30 = vector.shape_cast %29 : vector<8x8x128xbf16> to vector<64x128xbf16>
    %c2 = arith.constant 2 : index
    %c0_17 = arith.constant 0 : index
    %c0_18 = arith.constant 0 : index
    %31 = vector.load %arg3[%c2, %c0_17, %c0_18] : memref<3x128x128xbf16, #tpu.memory_space<vmem>>, vector<1x128x128xbf16>
    %32 = vector.shape_cast %31 : vector<1x128x128xbf16> to vector<128x128xbf16>
    %cst_19 = arith.constant dense<0.000000e+00> : vector<64x128xf32>
    %33 = tpu.matmul %30, %32, %cst_19 {dimension_numbers = #tpu.dot_dimension_numbers<[1], [0], [0], [1], [0, 0, 1, 1], [], []>} : vector<64x128xbf16>, vector<128x128xbf16>, vector<64x128xf32> -> vector<64x128xf32>
    %34 = arith.addf %28, %33 : vector<64x128xf32>
    %c0_20 = arith.constant 0 : index
    %c0_21 = arith.constant 0 : index
    %35 = vector.load %arg4[%c0_20, %c0_21] : memref<1x128xf32, #tpu.memory_space<vmem>>, vector<1x128xf32>
    %36 = vector.broadcast %35 : vector<1x128xf32> to vector<64x128xf32>
    %37 = arith.addf %34, %36 : vector<64x128xf32>
    %cst_22 = arith.constant 0.000000e+00 : f32
    %38 = vector.broadcast %cst_22 : f32 to vector<64x128xf32>
    %39 = arith.maximumf %37, %38 : vector<64x128xf32>
    %40 = vector.shape_cast %39 : vector<64x128xf32> to vector<8x8x128xf32>
    %41 = arith.truncf %40 : vector<8x8x128xf32> to vector<8x8x128xbf16>
    %c0_23 = arith.constant 0 : index
    %c0_24 = arith.constant 0 : index
    %c0_25 = arith.constant 0 : index
    %c0_26 = arith.constant 0 : index
    %42 = vector.load %arg5[%c0_23, %c0_24, %c0_25, %c0_26] : memref<1x8x8x128xbf16, #tpu.memory_space<vmem>>, vector<1x8x8x128xbf16>
    %43 = vector.shape_cast %42 : vector<1x8x8x128xbf16> to vector<8x8x128xbf16>
    %44 = vector.shape_cast %41 : vector<8x8x128xbf16> to vector<1x8x8x128xbf16>
    tpu.vector_store %arg5[%c0_23, %c0_24, %c0_25, %c0_26], %44 {strides = array<i32>} : memref<1x8x8x128xbf16, #tpu.memory_space<vmem>>, vector<1x8x8x128xbf16>,
    return
  }
  func.func @transform_1(%arg0: i32, %arg1: i32) -> (i32, i32, i32) {
    %c0_i32 = arith.constant 0 : i32
    %c0_i32_0 = arith.constant 0 : i32
    %c0_i32_1 = arith.constant 0 : i32
    %c0_i32_2 = arith.constant 0 : i32
    return %c0_i32, %c0_i32_0, %c0_i32_1 : i32, i32, i32
  }
  func.func @transform_2(%arg0: i32, %arg1: i32) -> (i32, i32) {
    %c0_i32 = arith.constant 0 : i32
    %c0_i32_0 = arith.constant 0 : i32
    %c0_i32_1 = arith.constant 0 : i32
    return %c0_i32, %c0_i32_0 : i32, i32
  }
  func.func @transform_3(%arg0: i32, %arg1: i32) -> (i32, i32, i32, i32) {
    %c0_i32 = arith.constant 0 : i32
    %c0_i32_0 = arith.constant 0 : i32
    %c0_i32_1 = arith.constant 0 : i32
    return %arg0, %arg1, %c0_i32, %c0_i32_0 : i32, i32, i32, i32
  }
}

</mosaic_0001>

<bundles_post_ra>
// kernel: decoder_block.1
= control target key start
LH: loop header
LB: loop body
LE: loop exit
PB: predicated region body
PF: predicated region fallthrough
CT: control target
= control target key end

     0   :  { %s1221_s12 = smov 0   ;;  %s1223_s13 = smov 0   ;;  %s1335_s0 = inlined_call_operand.vmem [shape: bf16[2,10,8,128], index: 0, kind: input, shape index: {}]   ;;  %s1336_s1 = inlined_call_operand.vmem [shape: bf16[3,128,128], index: 1, kind: input, shape index: {}]   ;;  %s1337_s2 = inlined_call_operand.vmem [shape: f32[1,128], index: 2, kind: input, shape index: {}]   ;;  %s1338_s3 = inlined_call_operand.vmem [shape: bf16[2,8,8,128], index: 3, kind: output, shape index: {}]  }
   0x1   :  { %s1225_s14 = smov 0  }
   0x2 LB: > { %s25_s15 = sadd.s32 1, %s1195_s13  ;;  %p882_p0 = scmp.ge.s32.totalorder %s1199_s14, 1  ;;  %s1199_s14 = sphi %s1225_s14, %s13_s14   ;;  %s1195_s13 = sphi %s1223_s13, %s1340_s13   ;;  %s1191_s12 = sphi %s1221_s12, %s1339_s12  }
   0x3   : > { %p27_p1 = scmp.ge.s32.totalorder %s25_s15, 2  ;;  %p117_p2 = scmp.lt.s32.totalorder %s1199_s14, 3 }
   0x5   : > { %s1342_s15 = smov (%p27_p1, %s25_s15), 0  ;;  %p118_p3 = pnand %p882_p0, %p117_p2 }
   0x6   : > { %p139_p4 = scmp.lt.s32.totalorder (!%p118_p3), %s1191_s12, 1  ;;  %s970_s16 = smul.u32 (!%p118_p3), 40, %s1191_s12 }
   0x7   : > { %121 = sbr.rel (%p118_p3) target bundleno = 292 (0x124), region = 28 }
   0x8   : > { %s156_s19 = scalar_lea.vmem (!%p118_p3), %s1335_s0, %s970_s16 }
   0xc   : > { %s1344_s12 = smov (!%p139_p4, %s1191_s12), 1  ;;  %v190_v0 = vld [vmem:[%s156_s19] sm:$0xff]  ;;  %v192_v1 = vld [vmem:[%s156_s19 + $0x8] sm:$0xff]  ;;  %v194_v2 = vld [vmem:[%s156_s19 + $0x10] sm:$0xff] }
   0xd   : > { %s969_s20 = sshll.u32 %s1344_s12, 5  ;;  %191 = vst [vmem:[#allocation2] sm:$0xff] %v190_v0  ;;  %193 = vst [vmem:[#allocation2 + $0x8] sm:$0xff] %v192_v1  ;;  %v196_v3 = vld [vmem:[%s156_s19 + $0x18] sm:$0xff]  ;;  %v198_v4 = vld [vmem:[%s156_s19 + $0x20] sm:$0xff] }
   0xe   : > { %s1245_s23 = scalar_lea.vmem %s1338_s3, %s969_s20  ;;  %195 = vst [vmem:[#allocation2 + $0x10] sm:$0xff] %v194_v2  ;;  %197 = vst [vmem:[#allocation2 + $0x18] sm:$0xff] %v196_v3 }
   0xf   : > { %199 = vst [vmem:[#allocation2 + $0x20] sm:$0xff] %v198_v4 }
  0x10   : > { %207 = vsyncadd [#allocation3], 640 }
  0x11   : > { %1187 = dma.done.wait [#allocation3], 640 }
  0x12   : > { %1188 = vsyncadd [#allocation3], 4294966656  ;;  %v1142_v5 = vld [vmem:[%s1336_s1 + $0x78] sm:$0xff]   ;;  %v1144_v7 = vld [vmem:[%s1336_s1 + $0x70] sm:$0xff]  }
  0x13   : > { %v1143_v6 = vld [vmem:[%s1336_s1 + $0x38] sm:$0xff]   ;;  %1030 = vmatprep.subr.bf16.mxu0 %v1142_v5  ;;  %v1145_v8 = vld [vmem:[%s1336_s1 + $0x30] sm:$0xff]   ;;  %v1146_v9 = vld [vmem:[%s1336_s1 + $0x68] sm:$0xff]  }
  0x14   : > { %1054 = vmatprep.subr.bf16.mxu1 %v1143_v6  ;;  %1031 = vmatpush3.bf16.msra.mxu0 %v1142_v5  ;;  %v1147_v10 = vld [vmem:[%s1336_s1 + $0x28] sm:$0xff]   ;;  %v1148_v11 = vld [vmem:[%s1336_s1 + $0x60] sm:$0xff]   ;;  %v1150_v13 = vld [vmem:[%s1336_s1 + $0x58] sm:$0xff]  }
  0x15   : > { %1055 = vmatpush3.bf16.msra.mxu1 %v1143_v6  ;;  %1032 = vmatprep.subr.bf16.mxu0 %v1144_v7  ;;  %v1149_v12 = vld [vmem:[%s1336_s1 + $0x20] sm:$0xff]   ;;  %v1151_v14 = vld [vmem:[%s1336_s1 + $0x18] sm:$0xff]   ;;  %v1152_v15 = vld [vmem:[%s1336_s1 + $0x50] sm:$0xff]  }
  0x16   : > { %1056 = vmatprep.subr.bf16.mxu1 %v1145_v8  ;;  %v284_v16 = vld [vmem:[#allocation2 + $0x4] sm:$0xf]  ;;  %v285_v17 = vld [vmem:[#allocation2 + $0x8] sm:$0xf]  ;;  %v1153_v18 = vld [vmem:[%s1336_s1 + $0x10] sm:$0xff]  }
  0x17   : > { %v915_v19 = vcombine.low %v284_v16, %v285_v17  ;;  %v283_v20 = vld [vmem:[#allocation2] sm:$0xf]  ;;  %v1154_v22 = vld [vmem:[%s1336_s1 + $0x48] sm:$0xff]   ;;  %v287_v27 = vld [vmem:[#allocation2 + $0x10] sm:$0xf] }
  0x18   : > { %1033 = vmatpush3.bf16.msra.mxu0 %v1144_v7  ;;  %v927_v21 = vcombine.low %v283_v20, %v284_v16  ;;  %v1155_v23 = vld [vmem:[%s1336_s1 + $0x8] sm:$0xff]   ;;  %v1156_v24 = vld [vmem:[%s1336_s1 + $0x40] sm:$0xff]   ;;  %v1162_v28 = vld [vmem:[%s1336_s1 + $0xb8] sm:$0xff]  }
  0x19   : > { %1057 = vmatpush3.bf16.msra.mxu1 %v1145_v8  ;;  %1034 = vmatprep.subr.bf16.mxu0 %v1146_v9  ;;  %v1157_v25 = vld [vmem:[%s1336_s1] sm:$0xff]   ;;  %v286_v26 = vld [vmem:[#allocation2 + $0xc] sm:$0xf]  ;;  %v288_v30 = vld [vmem:[#allocation2 + $0x14] sm:$0xf] }
  0x1a   : > { %1058 = vmatprep.subr.bf16.mxu1 %v1147_v10  ;;  %1046 = vmatprep.mubr.bf16.mxu0 %v915_v19  ;;  %v916_v29 = vcombine.low %v286_v26, %v287_v27  ;;  %v289_v31 = vld [vmem:[#allocation2 + $0x18] sm:$0xf]  ;;  %v928_v32 = vcombine.low %v285_v17, %v286_v26  ;;  %v1163_v33 = vld [vmem:[%s1336_s1 + $0xb0] sm:$0xff]   ;;  %v929_v35 = vcombine.low %v287_v27, %v288_v30  ;;  %v290_v36 = vld [vmem:[#allocation2 + $0x1c] sm:$0xf] }
  0x1b   : > { %1070 = vmatprep.mubr.bf16.mxu1 %v927_v21  ;;  %v917_v34 = vcombine.low %v288_v30, %v289_v31  ;;  %v291_v37 = vld [vmem:[#allocation2 + $0x20] sm:$0xf]  ;;  %v1164_v38 = vld [vmem:[%s1336_s1 + $0xa8] sm:$0xff]   ;;  %v930_v40 = vcombine.low %v289_v31, %v290_v36  ;;  %v1166_v42 = vld [vmem:[%s1336_s1 + $0x98] sm:$0xff]  }
  0x1c   : > { %1035 = vmatpush3.bf16.msra.mxu0 %v1146_v9  ;;  %v918_v39 = vcombine.low %v290_v36, %v291_v37  ;;  %v1165_v41 = vld [vmem:[%s1336_s1 + $0xa0] sm:$0xff]   ;;  %v1172_v43 = vld [vmem:[%s1336_s1 + $0x90] sm:$0xff]   ;;  %v1173_v44 = vld [vmem:[%s1336_s1 + $0x88] sm:$0xff]  }
  0x1d   : > { %1059 = vmatpush3.bf16.msra.mxu1 %v1147_v10  ;;  %1036 = vmatprep.subr.bf16.mxu0 %v1148_v11  ;;  %v1174_v45 = vld [vmem:[%s1336_s1 + $0x80] sm:$0xff]  }
  0x1e   : > { %1060 = vmatprep.subr.bf16.mxu1 %v1149_v12  ;;  %v292_v46 = vld [vmem:[#allocation2 + $0x24] sm:$0xf]  ;;  %v964_v7 = vld [vmem:[%s1337_s2] ss:$0 sm:$0xff] }
  0x1f   : > { %v955_v47 = vcombine.low %v291_v37, %v292_v46 }
  0x20   : > { %1037 = vmatpush3.bf16.msra.mxu0 %v1148_v11 }
  0x21   : > { %1061 = vmatpush3.bf16.msra.mxu1 %v1149_v12  ;;  %1038 = vmatprep.subr.bf16.mxu0 %v1150_v13 }
  0x22   : > { %1062 = vmatprep.subr.bf16.mxu1 %v1151_v14 }
  0x24   : > { %1039 = vmatpush3.bf16.msra.mxu0 %v1150_v13 }
  0x25   : > { %1063 = vmatpush3.bf16.msra.mxu1 %v1151_v14  ;;  %1040 = vmatprep.subr.bf16.mxu0 %v1152_v15 }
  0x26   : > { %1064 = vmatprep.subr.bf16.mxu1 %v1153_v18 }
  0x28   : > { %1041 = vmatpush3.bf16.msra.mxu0 %v1152_v15 }
  0x29   : > { %1065 = vmatpush3.bf16.msra.mxu1 %v1153_v18  ;;  %1042 = vmatprep.subr.bf16.mxu0 %v1154_v22 }
  0x2a   : > { %1066 = vmatprep.subr.bf16.mxu1 %v1155_v23 }
  0x2c   : > { %1043 = vmatpush3.bf16.msra.mxu0 %v1154_v22 }
  0x2d   : > { %1067 = vmatpush3.bf16.msra.mxu1 %v1155_v23  ;;  %1044 = vmatprep.subr.bf16.mxu0 %v1156_v24 }
  0x2e   : > { %1068 = vmatprep.subr.bf16.mxu1 %v1157_v25 }
  0x30   : > { %1045 = vmatpush3.bf16.msra.mxu0 %v1156_v24 }
  0x31   : > { %1069 = vmatpush3.bf16.msra.mxu1 %v1157_v25  ;;  %1078 = vmatprep.subr.bf16.mxu0 %v1162_v28 }
  0x32   : > { %1102 = vmatprep.subr.bf16.mxu1 %v1162_v28 }
  0x33   : > { %1047 = vmatmul.mubr.bf16.vlgmr.msra.gmra.mxu0 %v916_v29 }
  0x34   : > { %1071 = vmatmul.mubr.bf16.vlgmr.msra.gmra.mxu1 %v928_v32  ;;  %1079 = vmatpush3.bf16.msra.mxu0 %v1162_v28 }
  0x35   : > { %1110 = vmatpush3.bf16.msra.mxu1 %v1162_v28  ;;  %1080 = vmatprep.subr.bf16.mxu0 %v1163_v33 }
  0x36   : > { %1103 = vmatprep.subr.bf16.mxu1 %v1163_v33  ;;  %1050 = vmatprep.mubr.bf16.mxu0 %v917_v34 }
  0x37   : > { %1074 = vmatprep.mubr.bf16.mxu1 %v929_v35 }
  0x38   : > { %1081 = vmatpush3.bf16.msra.mxu0 %v1163_v33 }
  0x39   : > { %1111 = vmatpush3.bf16.msra.mxu1 %v1163_v33  ;;  %1082 = vmatprep.subr.bf16.mxu0 %v1164_v38 }
  0x3a   : > { %1104 = vmatprep.subr.bf16.mxu1 %v1164_v38 }
  0x3b   : > { %1051 = vmatmul.mubr.bf16.gmra.mxu0 %v918_v39 }
  0x3c   : > { %1083 = vmatpush3.bf16.msra.mxu0 %v1164_v38  ;;  %1075 = vmatmul.mubr.bf16.gmra.mxu1 %v930_v40 }
  0x3d   : > { %1112 = vmatpush3.bf16.msra.mxu1 %v1164_v38  ;;  %1084 = vmatprep.subr.bf16.mxu0 %v1165_v41 }
  0x3e   : > { %1105 = vmatprep.subr.bf16.mxu1 %v1165_v41  ;;  %1094 = vmatprep.mubr.bf16.mxu0 %v928_v32 }
  0x3f   : > { %1098 = vmatprep.mubr.bf16.mxu1 %v930_v40 }
  0x40   : > { %1085 = vmatpush3.bf16.msra.mxu0 %v1165_v41 }
  0x41   : > { %1113 = vmatpush3.bf16.msra.mxu1 %v1165_v41  ;;  %1086 = vmatprep.subr.bf16.mxu0 %v1166_v42 }
  0x42   : > { %1106 = vmatprep.subr.bf16.mxu1 %v1166_v42 }
  0x44   : > { %1087 = vmatpush3.bf16.msra.mxu0 %v1166_v42 }
  0x45   : > { %1114 = vmatpush3.bf16.msra.mxu1 %v1166_v42  ;;  %1088 = vmatprep.subr.bf16.mxu0 %v1172_v43 }
  0x46   : > { %1107 = vmatprep.subr.bf16.mxu1 %v1172_v43 }
  0x48   : > { %1089 = vmatpush3.bf16.msra.mxu0 %v1172_v43 }
  0x49   : > { %1115 = vmatpush3.bf16.msra.mxu1 %v1172_v43  ;;  %1090 = vmatprep.subr.bf16.mxu0 %v1173_v44 }
  0x4a   : > { %1108 = vmatprep.subr.bf16.mxu1 %v1173_v44 }
  0x4c   : > { %1091 = vmatpush3.bf16.msra.mxu0 %v1173_v44 }
  0x4d   : > { %1116 = vmatpush3.bf16.msra.mxu1 %v1173_v44  ;;  %1092 = vmatprep.subr.bf16.mxu0 %v1174_v45 }
  0x4e   : > { %1109 = vmatprep.subr.bf16.mxu1 %v1174_v45 }
  0x50   : > { %1093 = vmatpush3.bf16.msra.mxu0 %v1174_v45 }
  0x51   : > { %1117 = vmatpush3.bf16.msra.mxu1 %v1174_v45 }
  0x53   : > { %1095 = vmatmul.mubr.bf16.vlgmr.msra.gmra.mxu0 %v929_v35 }
  0x54   : > { %1099 = vmatmul.mubr.bf16.vlgmr.msra.gmra.mxu1 %v955_v47 }
  0xf3   : > { %v1048_v48 = vpop.f32.mrf.mxu0 }
  0xf4   : > { %v1072_v49 = vpop.f32.mrf.mxu1 }
  0xf5   : > { %v432_v50 = vpop.f32.mrf.mxu0  ;;  %v564_v63 = vadd.f32 %v1072_v49, %v1048_v48 }
  0xf6   : > { %v555_v51 = vpop.f32.mrf.mxu1 }
  0xf7   : > { %v1049_v52 = vpop.f32.mrf.mxu0  ;;  %v556_v3 = vadd.f32 %v555_v51, %v432_v50 }
  0xf8   : > { %v1073_v53 = vpop.f32.mrf.mxu1 }
  0xf9   : > { %v435_v54 = vpop.f32.mrf.mxu0  ;;  %v567_v10 = vadd.f32 %v1073_v53, %v1049_v52 }
  0xfa   : > { %v558_v55 = vpop.f32.mrf.mxu1 }
  0xfb   : > { %v1052_v56 = vpop.f32.mrf.mxu0  ;;  %v559_v16 = vadd.f32 %v558_v55, %v435_v54 }
  0xfc   : > { %v1076_v57 = vpop.f32.mrf.mxu1 }
  0xfd   : > { %v448_v58 = vpop.f32.mrf.mxu0  ;;  %v580_v1 = vadd.f32 %v1076_v57, %v1052_v56 }
  0xfe   : > { %v571_v59 = vpop.f32.mrf.mxu1 }
  0xff   : > { %v1053_v60 = vpop.f32.mrf.mxu0  ;;  %v572_v6 = vadd.f32 %v571_v59, %v448_v58 }
 0x100   : > { %v1077_v61 = vpop.f32.mrf.mxu1 }
 0x101   : > { %v451_v62 = vpop.f32.mrf.mxu0  ;;  %v583_v13 = vadd.f32 %v1077_v61, %v1053_v60 }
 0x102   : > { %v574_v0 = vpop.f32.mrf.mxu1 }
 0x103   : > { %v575_v20 = vadd.f32 %v574_v0, %v451_v62 }
 0x113   : > { %v1096_v2 = vpop.f32.mrf.mxu0 }
 0x114   : > { %v722_v4 = vadd.f32 %v1096_v2, %v564_v63  ;;  %v1100_v5 = vpop.f32.mrf.mxu1 }
 0x115   : > { %v726_v8 = vadd.f32 %v1100_v5, %v580_v1  ;;  %v689_v9 = vpop.f32.mrf.mxu0 }
 0x116   : > { %v720_v11 = vadd.f32 %v689_v9, %v556_v3  ;;  %v705_v12 = vpop.f32.mrf.mxu1  ;;  %v737_v17 = vadd.f32 %v964_v7, %v722_v4 }
 0x117   : > { %v724_v14 = vadd.f32 %v705_v12, %v572_v6  ;;  %v1097_v15 = vpop.f32.mrf.mxu0  ;;  %v741_v21 = vadd.f32 %v964_v7, %v726_v8 }
 0x118   : > { %v723_v18 = vadd.f32 %v1097_v15, %v567_v10  ;;  %v1101_v19 = vpop.f32.mrf.mxu1  ;;  %v735_v24 = vadd.f32 %v964_v7, %v720_v11  ;;  %v745_v31 = vmax.f32 %v737_v17, 0.0 }
 0x119   : > { %v727_v22 = vadd.f32 %v1101_v19, %v583_v13  ;;  %v692_v23 = vpop.f32.mrf.mxu0  ;;  %v739_v28 = vadd.f32 %v964_v7, %v724_v14  ;;  %v749_v34 = vmax.f32 %v741_v21, 0.0 }
 0x11a   : > { %v738_v25 = vadd.f32 %v964_v7, %v723_v18  ;;  %v721_v26 = vadd.f32 %v692_v23, %v559_v16  ;;  %v708_v27 = vpop.f32.mrf.mxu1  ;;  %v743_v37 = vmax.f32 %v735_v24, 0.0 }
 0x11b   : > { %v742_v29 = vadd.f32 %v964_v7, %v727_v22  ;;  %v725_v30 = vadd.f32 %v708_v27, %v575_v20  ;;  %v747_v40 = vmax.f32 %v739_v28, 0.0 }
 0x11c   : > { %v746_v32 = vmax.f32 %v738_v25, 0.0  ;;  %v736_v33 = vadd.f32 %v964_v7, %v721_v26 }
 0x11d   : > { %v750_v35 = vmax.f32 %v742_v29, 0.0  ;;  %v740_v36 = vadd.f32 %v964_v7, %v725_v30 }
 0x11e   : > { %v979_v38 = vpack.c.bf16 %v746_v32, %v745_v31  ;;  %v744_v39 = vmax.f32 %v736_v33, 0.0 }
 0x11f   : > { %v989_v41 = vpack.c.bf16 %v750_v35, %v749_v34  ;;  %v748_v42 = vmax.f32 %v740_v36, 0.0 }
 0x120   : > { %991 = vst [vmem:[%s1245_s23 + $0x8] sm:$0xff] %v979_v38   ;;  %v974_v43 = vpack.c.bf16 %v744_v39, %v743_v37 }
 0x121   : > { %993 = vst [vmem:[%s1245_s23 + $0x18] sm:$0xff] %v989_v41   ;;  %v984_v44 = vpack.c.bf16 %v748_v42, %v747_v40 }
 0x122   : > { %975 = vst [vmem:[%s1245_s23] sm:$0xff] %v974_v43  }
 0x123   : > { %992 = vst [vmem:[%s1245_s23 + $0x10] sm:$0xff] %v984_v44  }
 0x124 PF: > { %s13_s14 = sadd.s32 1, %s1199_s14   ;;  %s1339_s12 = smov %s1195_s13 }
 0x125   : > { %p10_p5 = scmp.ge.s32.totalorder %s13_s14, 4   ;;  %s1340_s13 = smov %s1342_s15 }
 0x127   :  { %12 = sbr.rel (!%p10_p5) target bundleno = 2 (0x2), region = 156 }
 0x12c   :  { %797 = vsyncmov [#allocation3] }
 0x12f   :  { %s798_s28 = vpop.sfrf %797 }
 0x130   :  { %p967_p6 = scmp.ne.s32.totalorder %s798_s28, 0 }
 0x132   :  { %802 = shalt.err (%p967_p6)  }
 0x133   :  { %804 = vsyncmov [#allocation3 + $0x1] }
 0x136   :  { %s805_s29 = vpop.sfrf %804 }
 0x137   :  { %p968_p7 = scmp.ne.s32.totalorder %s805_s29, 0 }
 0x139   :  { %809 = shalt.err (%p968_p7)  }

</bundles_post_ra>
